<compile_context>
chip_gen: v7x
topology: tpu7x:2x2x1
jax: 0.10.0
libtpu: 0.0.40
codegen_flags: <defaults>
</compile_context>

<pallas_src>
import functools

import jax
import jax.numpy as jnp
from jax.experimental import pallas as pl
from jax.experimental.pallas import tpu as pltpu

BN_EPS = 1e-5


def _linreg_kernel(w_ref, b_ref, x_ref, out_ref):
    """out[o] = sum_f w[f, o] * x[f] + b[0, o]   (pure VPU FMAs on dense slabs).

    w_ref:   SMEM [F, O]      folded weight (BN scale + Linear W + y_std baked in)
    b_ref:   SMEM [1, O]      folded bias   (BN shift + Linear b + y_mean baked in)
    x_ref:   VMEM [F, R, 128] batch slab (batch on sublane+lane axes)
    out_ref: VMEM [O, R, 128] output slab
    """
    n_f = x_ref.shape[0]
    n_o = out_ref.shape[0]
    for o in range(n_o):                         # unrolled: O is tiny & static
        acc = x_ref[0] * w_ref[0, o]             # [R, 128] * scalar
        for f in range(1, n_f):                  # unrolled: F is tiny & static
            acc = acc + x_ref[f] * w_ref[f, o]
        out_ref[o] = acc + b_ref[0, o]           # dense unmasked store


def _round_up(n, m):
    return ((n + m - 1) // m) * m


@functools.partial(jax.jit, static_argnames=("block_b",))
def linear_regression_forward(x, w_eff_t, b_eff, *, block_b=262144):
    """Eval-mode forward: x [B, F] -> [B, O] float32.

    w_eff_t: [F, O] folded weight, b_eff: [O] folded bias (see fold_params).
    block_b: target batch elements per grid step (multiple of 1024 recommended).
    """
    B, F = x.shape
    O = w_eff_t.shape[1]
    x = x.astype(jnp.float32)

    # ---- tiling (all static under jit) -------------------------------------
    b_pad = _round_up(max(B, 1), 128)
    n_rows = b_pad // 128                         # rows of 128 batch elements
    target_rows = max(block_b // 128, 8)
    if n_rows > target_rows:
        # Multi-step: >=2 steps (megacore), rows per step rounded to sublane=8,
        # total rows rounded to a multiple of the step size (minimal padding).
        n_steps = pl.cdiv(n_rows, target_rows)
        rows_per_step = _round_up(pl.cdiv(n_rows, n_steps), 8)
        n_rows = _round_up(n_rows, rows_per_step)
        b_pad = n_rows * 128
    else:
        rows_per_step = n_rows                    # single full-extent block
    grid = (n_rows // rows_per_step,)

    # ---- slab layout: [B, F] -> [F, n_rows, 128] ---------------------------
    x_t = x.T                                     # [F, B]
    if b_pad != B:
        x_t = jnp.pad(x_t, ((0, 0), (0, b_pad - B)))
    x3 = x_t.reshape(F, n_rows, 128)

    # ---- VMEM budget (double-buffered input + output tiles) ----------------
    tile_bytes = (F + O) * rows_per_step * 128 * 4
    vmem_limit = min(max(2 * 2 * tile_bytes, 32 << 20), 120 << 20)

    smem = pl.BlockSpec(memory_space=pltpu.MemorySpace.SMEM)
    out3 = pl.pallas_call(
        _linreg_kernel,
        out_shape=jax.ShapeDtypeStruct((O, n_rows, 128), jnp.float32),
        grid=grid,
        in_specs=[
            smem,                                               # w_eff_t [F, O]
            smem,                                               # b_eff   [1, O]
            pl.BlockSpec((F, rows_per_step, 128), lambda i: (0, i, 0)),
        ],
        out_specs=pl.BlockSpec((O, rows_per_step, 128), lambda i: (0, i, 0)),
        compiler_params=pltpu.CompilerParams(
            dimension_semantics=("parallel",),     # shard steps over 2 TCs (v7x)
            vmem_limit_bytes=vmem_limit),
        cost_estimate=pl.CostEstimate(
            flops=2 * B * F * O,
            transcendentals=0,
            bytes_accessed=4 * (B * F + F * O + O + B * O)),
    )(w_eff_t, b_eff.reshape(1, O), x3)

    return out3.reshape(O, b_pad)[:, :B].T        # back to [B, O]


def fold_params(w, b, gamma, beta, running_mean, running_var,
                y_mean, y_std, eps=BN_EPS):
    """Constant-fold BatchNorm1d(eval) + y_std/y_mean denorm into Linear W/b.

    w: [O, F] (PyTorch nn.Linear layout), b: [O]; BN vectors are [F];
    y_mean/y_std are [O].  Returns (w_eff_t [F, O], b_eff [O]) such that
    forward(x) == x @ w_eff_t + b_eff.
    """
    inv_std = jax.lax.rsqrt(running_var + eps)            # [F]
    scale = gamma * inv_std                               # [F]
    shift = beta - running_mean * scale                   # [F]
    w_eff_t = w.T * scale[:, None] * y_std[None, :]       # [F, O]
    b_eff = (shift @ w.T + b) * y_std + y_mean            # [O]
    return w_eff_t, b_eff


def make_params(input_features=2, output_features=1):
    """Deterministic synthetic parameters matching the module's shapes."""
    key = jax.random.PRNGKey(0)
    k_w, k_b, k_m, k_v = jax.random.split(key, 4)

    # torch.nn.Linear(in, out): weight [out, in], bias [out]
    w = jax.random.uniform(k_w, (output_features, input_features),
                           jnp.float32, -0.5, 0.5)
    b = jax.random.uniform(k_b, (output_features,), jnp.float32, -0.5, 0.5)

    # torch.nn.BatchNorm1d(in): gamma=1, beta=0, plus (synthetic) running stats.
    gamma = jnp.ones((input_features,), jnp.float32)
    beta = jnp.zeros((input_features,), jnp.float32)
    running_mean = jax.random.normal(k_m, (input_features,), jnp.float32) * 0.1
    running_var = jnp.abs(jax.random.normal(k_v, (input_features,),
                                            jnp.float32)) + 1.0

    # Registered buffers: y_mean = zeros, y_std = ones (as in __init__).
    y_mean = jnp.zeros((output_features,), jnp.float32)
    y_std = jnp.ones((output_features,), jnp.float32)

    return dict(w=w, b=b, gamma=gamma, beta=beta,
                running_mean=running_mean, running_var=running_var,
                y_mean=y_mean, y_std=y_std)


def reference_forward(x, p, eps=BN_EPS):
    """Pure-JAX, un-fused reference of the eval-mode forward."""
    inv_std = jax.lax.rsqrt(p["running_var"] + eps)
    x_norm = (x - p["running_mean"]) * inv_std * p["gamma"] + p["beta"]
    out = x_norm @ p["w"].T + p["b"]
    return out * p["y_std"] + p["y_mean"]


if __name__ == "__main__":
    input_features, output_features = 2, 1

    # --- check 1: default module buffers, tiny batch (single grid step) -----
    p = make_params(input_features, output_features)
    x = jax.random.normal(jax.random.PRNGKey(0), (8, input_features),
                          jnp.float32)
    w_eff_t, b_eff = fold_params(p["w"], p["b"], p["gamma"], p["beta"],
                                 p["running_mean"], p["running_var"],
                                 p["y_mean"], p["y_std"])
    out = jax.block_until_ready(linear_regression_forward(x, w_eff_t, b_eff))
    ref = reference_forward(x, p)
    assert out.shape == (8, output_features)
    assert jnp.allclose(out, ref, atol=1e-5, rtol=1e-5), (out, ref)

    # --- check 2: non-trivial BN affine + denorm buffers, B=1000 ------------
    p2 = make_params(input_features, output_features)
    k1, k2, k3, k4 = jax.random.split(jax.random.PRNGKey(1), 4)
    p2["gamma"] = jax.random.uniform(k1, (input_features,), jnp.float32, 0.5, 1.5)
    p2["beta"] = jax.random.normal(k2, (input_features,), jnp.float32) * 0.2
    p2["y_std"] = jax.random.uniform(k3, (output_features,), jnp.float32, 0.5, 2.0)
    p2["y_mean"] = jax.random.normal(k4, (output_features,), jnp.float32)
    x2 = jax.random.normal(jax.random.PRNGKey(2), (1000, input_features),
                           jnp.float32)
    w2, b2 = fold_params(p2["w"], p2["b"], p2["gamma"], p2["beta"],
                         p2["running_mean"], p2["running_var"],
                         p2["y_mean"], p2["y_std"])
    out2 = jax.block_until_ready(linear_regression_forward(x2, w2, b2))
    ref2 = reference_forward(x2, p2)
    assert out2.shape == (1000, output_features)
    assert jnp.allclose(out2, ref2, atol=1e-4, rtol=1e-4), (out2, ref2)

    # --- check 3: multi-step pipelined grid (small block_b forces 5 steps) --
    x3 = jax.random.normal(jax.random.PRNGKey(3), (5000, input_features),
                           jnp.float32)
    out3 = jax.block_until_ready(
        linear_regression_forward(x3, w2, b2, block_b=1024))
    ref3 = reference_forward(x3, p2)
    assert out3.shape == (5000, output_features)
    assert jnp.allclose(out3, ref3, atol=1e-4, rtol=1e-4)

    print("KERNEL_OK")
</pallas_src>

<mosaic_0001>
module attributes {stable_mosaic.version = 11 : i64} {
  func.func @_linreg_kernel(%arg0: i32, %arg1: memref<2x1xf32, #tpu.memory_space<smem>>, %arg2: memref<1x1xf32, #tpu.memory_space<smem>>, %arg3: memref<2x1x128xf32, #tpu.memory_space<vmem>>, %arg4: memref<1x1x128xf32, #tpu.memory_space<vmem>>) attributes {dimension_semantics = [#tpu.dimension_semantics<parallel>], iteration_bounds = array<i64: 1>, scalar_prefetch = 0 : i64, scratch_operands = 0 : i64, tpu.core_type = #tpu.core_type<tc>, window_params = [{transform_indices = @transform_0, window_bounds = array<i64: 2, 1>}, {transform_indices = @transform_1, window_bounds = array<i64: 1, 1>}, {transform_indices = @transform_2, window_bounds = array<i64: 2, 1, 128>}, {transform_indices = @transform_3, window_bounds = array<i64: 1, 1, 128>}]} {
    %c0 = arith.constant 0 : index
    %c0_0 = arith.constant 0 : index
    %c0_1 = arith.constant 0 : index
    %0 = vector.load %arg3[%c0, %c0_0, %c0_1] : memref<2x1x128xf32, #tpu.memory_space<vmem>>, vector<1x1x128xf32>
    %1 = vector.shape_cast %0 : vector<1x1x128xf32> to vector<1x128xf32>
    %c0_2 = arith.constant 0 : index
    %c0_3 = arith.constant 0 : index
    %2 = memref.load %arg1[%c0_2, %c0_3] : memref<2x1xf32, #tpu.memory_space<smem>>
    %3 = vector.broadcast %2 : f32 to vector<1x128xf32>
    %4 = arith.mulf %1, %3 : vector<1x128xf32>
    %c1 = arith.constant 1 : index
    %c0_4 = arith.constant 0 : index
    %c0_5 = arith.constant 0 : index
    %5 = vector.load %arg3[%c1, %c0_4, %c0_5] : memref<2x1x128xf32, #tpu.memory_space<vmem>>, vector<1x1x128xf32>
    %6 = vector.shape_cast %5 : vector<1x1x128xf32> to vector<1x128xf32>
    %c1_6 = arith.constant 1 : index
    %c0_7 = arith.constant 0 : index
    %7 = memref.load %arg1[%c1_6, %c0_7] : memref<2x1xf32, #tpu.memory_space<smem>>
    %8 = vector.broadcast %7 : f32 to vector<1x128xf32>
    %9 = arith.mulf %6, %8 : vector<1x128xf32>
    %10 = arith.addf %4, %9 : vector<1x128xf32>
    %c0_8 = arith.constant 0 : index
    %c0_9 = arith.constant 0 : index
    %11 = memref.load %arg2[%c0_8, %c0_9] : memref<1x1xf32, #tpu.memory_space<smem>>
    %12 = vector.broadcast %11 : f32 to vector<1x128xf32>
    %13 = arith.addf %10, %12 : vector<1x128xf32>
    %c0_10 = arith.constant 0 : index
    %c0_11 = arith.constant 0 : index
    %c0_12 = arith.constant 0 : index
    %14 = vector.load %arg4[%c0_10, %c0_11, %c0_12] : memref<1x1x128xf32, #tpu.memory_space<vmem>>, vector<1x1x128xf32>
    %15 = vector.shape_cast %14 : vector<1x1x128xf32> to vector<1x128xf32>
    %16 = vector.shape_cast %13 : vector<1x128xf32> to vector<1x1x128xf32>
    tpu.vector_store %arg4[%c0_10, %c0_11, %c0_12], %16 {strides = array<i32>} : memref<1x1x128xf32, #tpu.memory_space<vmem>>, vector<1x1x128xf32>,
    return
  }
  func.func @transform_0(%arg0: i32) -> (i32, i32) {
    %c0_i32 = arith.constant 0 : i32
    %c0_i32_0 = arith.constant 0 : i32
    %c0_i32_1 = arith.constant 0 : i32
    return %c0_i32, %c0_i32_0 : i32, i32
  }
  func.func @transform_1(%arg0: i32) -> (i32, i32) {
    %c0_i32 = arith.constant 0 : i32
    %c0_i32_0 = arith.constant 0 : i32
    %c0_i32_1 = arith.constant 0 : i32
    return %c0_i32, %c0_i32_0 : i32, i32
  }
  func.func @transform_2(%arg0: i32) -> (i32, i32, i32) {
    %c0_i32 = arith.constant 0 : i32
    %c0_i32_0 = arith.constant 0 : i32
    %c0_i32_1 = arith.constant 0 : i32
    return %c0_i32, %arg0, %c0_i32_0 : i32, i32, i32
  }
  func.func @transform_3(%arg0: i32) -> (i32, i32, i32) {
    %c0_i32 = arith.constant 0 : i32
    %c0_i32_0 = arith.constant 0 : i32
    %c0_i32_1 = arith.constant 0 : i32
    return %c0_i32, %arg0, %c0_i32_0 : i32, i32, i32
  }
}

</mosaic_0001>

<bundles_post_ra>
// kernel: linear_regression_forward.1
= control target key start
LH: loop header
LB: loop body
LE: loop exit
PB: predicated region body
PF: predicated region fallthrough
CT: control target
= control target key end

     0   :  { %9 = vsyncpa [#allocation4], 0  ;;  %s100_s0 = inlined_call_operand.vmem [shape: f32[2,1], index: 0, kind: input, shape index: {}]   ;;  %s101_s1 = inlined_call_operand.<no memory space> [shape: f32[1,1], index: 1, kind: input, shape index: {}]   ;;  %s102_s2 = inlined_call_operand.vmem [shape: f32[2,1,128], index: 2, kind: input, shape index: {}]   ;;  %s103_s3 = inlined_call_operand.vmem [shape: f32[1,1,128], index: 3, kind: output, shape index: {}]  }
   0x1   :  { %s16_s14 = sshll.u32 %s100_s0, 4  ;;  %s17_s14 = int_to_ptr.vmem [resolvable:$true] %s16_s14 }
   0x2   :  { %s50_s15 = scalar_lea.vmem %s17_s14, 32  ;;  %p55_p1 = scmp.lt.s32.totalorder %s17_s14, %s17_s14 }
   0x3   :  { %p51_p0 = scmp.ne.s32.totalorder %s17_s14, %s50_s15  ;;  %p56_p2 = scmp.lt.s32.totalorder %s50_s15, %s50_s15 }
   0x5   :  { %p57_p3 = por %p56_p2, %p55_p1 }
   0x7   :  { %p58_p4 = pnand %p57_p3, %p51_p0 }
   0x9   :  { %61 = shalt.err (!%p58_p4)
}
   0xa   :  { %s64_s16 = smov [#allocation3]  }
   0xb   :  { %19 = dma.vmem_to_smem %s17_s14, 32, %s64_s16, [#allocation4]  }
   0xc   :  { %62 = dma.done.wait [#allocation4], 32  }
   0xd   :  { %63 = vsyncadd [#allocation4], 4294967264 }
   0xe   :  { %27 = sfence }
   0xf   :  { %s29_s17 = sld [smem:[#allocation3]]  ;;  %v28_v0 = vld [vmem:[%s102_s2] sm:$0x1]  ;;  %v47_v1 = vld [vmem:[%s102_s2 + $0x1] sm:$0x1]  ;;  %v39_v6 = vstv %s101_s1 }
  0x10   :  { %s48_s18 = sld [smem:[#allocation3 + $0x80]] }
  0x15   :  { %v30_v2 = vstv %s29_s17 }
  0x16   :  { %v31_v3 = vmul.f32 %v30_v2, %v28_v0  ;;  %v35_v4 = vstv %s48_s18 }
  0x17   :  { %v36_v5 = vmul.f32 %v47_v1, %v35_v4 }
  0x19   :  { %v37_v7 = vadd.f32 %v36_v5, %v31_v3 }
  0x1b   :  { %v40_v8 = vadd.f32 %v39_v6, %v37_v7 }
  0x1d   :  { %41 = vst [vmem:[%s103_s3] sm:$0x1] %v40_v8 }
  0x1e   :  { %46 = vsyncpa [#allocation4], 1 }

</bundles_post_ra>
